<compile_context>
chip_gen: v5e
topology: v5e:2x2
jax: 0.10.0
libtpu: 0.0.40
codegen_flags: <defaults>
</compile_context>

<pallas_src>
import numpy as np
import jax
import jax.numpy as jnp
from jax.experimental import pallas as pl
from jax.experimental.pallas import tpu as pltpu


def _section_sizes(split_size_or_sections, n):
    """Replicates torch.split's sectioning rule; returns (starts, sizes)."""
    if isinstance(split_size_or_sections, int):
        s = split_size_or_sections
        sizes = [s] * (n // s)
        if n % s:
            sizes.append(n % s)
    else:
        sizes = list(split_size_or_sections)
        assert sum(sizes) == n, "sections must sum to the dimension size"
    starts = [0]
    for sz in sizes[:-1]:
        starts.append(starts[-1] + sz)
    return starts, sizes


def _round_up(x, m):
    return ((x + m - 1) // m) * m


def _choose_block(n_units, unit_traffic_bytes, unit_padded_bytes, quantum,
                  override=None, target_step_bytes=8 << 20,
                  vmem_cap_bytes=24 << 20, min_steps=2):
    """Block extent along the pipelined grid axis.

    Largest multiple of `quantum` (8 sublanes / 128 lanes) such that the
    double-buffered, padding-aware VMEM footprint stays under
    `vmem_cap_bytes`, targeting ~`target_step_bytes` of HBM traffic per grid
    step, with at least `min_steps` balanced steps (v7x megacore) if possible.
    """
    if n_units <= quantum:
        return n_units                                    # block == full extent
    if override is not None:
        b = max(1, min(int(override), n_units))
        return b if b == n_units else min(n_units, _round_up(b, quantum))
    b = max(1, min(n_units, target_step_bytes // max(1, unit_traffic_bytes)))
    b = min(n_units, _round_up(b, quantum))
    # Keep the double-buffered padded footprint under the VMEM cap.
    while b > quantum and 2 * b * unit_padded_bytes > vmem_cap_bytes:
        b = max(quantum, (b // 2) // quantum * quantum)
    # Guarantee >= min_steps grid steps so both v7x TensorCores are used.
    if pl.cdiv(n_units, b) < min_steps and n_units >= min_steps * quantum:
        b = _round_up(pl.cdiv(n_units, min_steps), quantum)
    return b


def _make_col_split_kernel(col_starts, col_widths):
    """Split along the collapsed lane axis of the (R, C) view."""
    def kernel(x_ref, *out_refs):
        for out_ref, c0, w in zip(out_refs, col_starts, col_widths):
            out_ref[...] = x_ref[:, c0:c0 + w]
    return kernel


def _make_row_split_kernel(row_starts, row_heights):
    """dim == 0: split along the sublane axis of the (N, T) view."""
    def kernel(x_ref, *out_refs):
        for out_ref, r0, h in zip(out_refs, row_starts, row_heights):
            out_ref[...] = x_ref[r0:r0 + h, :]
    return kernel


def pallas_split(x, split_size_or_sections, dimension, block_override=None):
    """Pallas equivalent of torch.split(x, split_size_or_sections, dimension)."""
    ndim = x.ndim
    dim = dimension % ndim
    N = x.shape[dim]
    starts, sizes = _section_sizes(split_size_or_sections, N)
    itemsize = jnp.dtype(x.dtype).itemsize

    R = int(np.prod(x.shape[:dim], dtype=np.int64))        # leading dims
    T = int(np.prod(x.shape[dim + 1:], dtype=np.int64))    # trailing dims

    if R > 1 or T == 1:
        # --- Split along the collapsed lane axis of an (R, C = N*T) view. ---
        C = N * T
        col_starts = [s * T for s in starts]
        widths = [sz * T for sz in sizes]
        unit_traffic = 2 * C * itemsize                    # read row + write row
        unit_padded = (_round_up(C, 128)
                       + sum(_round_up(w, 128) for w in widths)) * itemsize
        bl = _choose_block(R, unit_traffic, unit_padded, 8,
                           override=block_override)
        grid = (pl.cdiv(R, bl),)
        x_view = x.reshape(R, C)
        in_specs = [pl.BlockSpec((bl, C), lambda i: (i, 0))]
        out_specs = tuple(pl.BlockSpec((bl, w), lambda i: (i, 0))
                          for w in widths)
        out_shape = tuple(jax.ShapeDtypeStruct((R, w), x.dtype) for w in widths)
        kernel = _make_col_split_kernel(col_starts, widths)
        footprint = 2 * _round_up(bl, 8) * unit_padded
    else:
        # --- dim == 0 (R == 1): split along rows of the (N, T) view. ---------
        unit_traffic = 2 * N * itemsize
        unit_padded = (_round_up(N, 8)
                       + sum(_round_up(sz, 8) for sz in sizes)) * itemsize
        bc = _choose_block(T, unit_traffic, unit_padded, 128,
                           override=block_override)
        grid = (pl.cdiv(T, bc),)
        x_view = x.reshape(N, T)
        in_specs = [pl.BlockSpec((N, bc), lambda j: (0, j))]
        out_specs = tuple(pl.BlockSpec((sz, bc), lambda j: (0, j))
                          for sz in sizes)
        out_shape = tuple(jax.ShapeDtypeStruct((sz, T), x.dtype) for sz in sizes)
        kernel = _make_row_split_kernel(starts, sizes)
        footprint = 2 * _round_up(bc, 128) * unit_padded

    # Raise scoped VMEM on v5e (16 MiB default); keep well under v7x's 64 MiB.
    vmem_limit = int(min(40 << 20, max(32 << 20, footprint + (4 << 20))))

    outs = pl.pallas_call(
        kernel,
        out_shape=out_shape,
        grid=grid,
        in_specs=in_specs,
        out_specs=out_specs,
        compiler_params=pltpu.CompilerParams(
            dimension_semantics=("parallel",),
            vmem_limit_bytes=vmem_limit),
        cost_estimate=pl.CostEstimate(
            flops=0, transcendentals=0,
            bytes_accessed=2 * x.size * itemsize),
    )(x_view)

    # Restore the original torch.split output shapes (contiguous reshapes).
    results = []
    for o, sz in zip(outs, sizes):
        full_shape = tuple(sz if d == dim else x.shape[d] for d in range(ndim))
        results.append(o.reshape(full_shape))
    return tuple(results)


if __name__ == "__main__":
    key = jax.random.PRNGKey(0)
    x = jax.random.normal(key, (2, 4, 16, 16), dtype=jnp.float32)

    def check(outs, sections_or_size, dim):
        if isinstance(sections_or_size, int):
            idx = list(range(sections_or_size, x.shape[dim], sections_or_size))
        else:
            idx = np.cumsum(sections_or_size)[:-1].tolist()
        ref = jnp.split(x, idx, axis=dim)
        assert len(outs) == len(ref)
        for o, r in zip(outs, ref):
            assert o.shape == r.shape and o.dtype == r.dtype
            np.testing.assert_allclose(np.asarray(o), np.asarray(r))

    # Case 1: explicit sections along dim 2 (non-128-aligned lane boundaries
    # after collapsing to the (R, N*T) view).
    outs = jax.block_until_ready(pallas_split(x, [4, 6, 6], 2))
    check(outs, [4, 6, 6], 2)

    # Case 2: integer split size along the last (lane) dim; the row grid gets
    # two balanced "parallel" steps (megacore-friendly).
    outs2 = jax.block_until_ready(pallas_split(x, 8, 3))
    check(outs2, 8, 3)

    # Case 3: split along dim 0 -> (N, T) row-split view, grid tiles the
    # collapsed trailing axis in 128-lane blocks.
    outs3 = jax.block_until_ready(pallas_split(x, 1, 0))
    check(outs3, 1, 0)

    print("KERNEL_OK")
</pallas_src>

<mosaic_0001>
module attributes {stable_mosaic.version = 11 : i64} {
  func.func @kernel(%arg0: i32, %arg1: memref<8x256xf32, #tpu.memory_space<vmem>>, %arg2: memref<8x64xf32, #tpu.memory_space<vmem>>, %arg3: memref<8x96xf32, #tpu.memory_space<vmem>>, %arg4: memref<8x96xf32, #tpu.memory_space<vmem>>) attributes {dimension_semantics = [#tpu.dimension_semantics<parallel>], iteration_bounds = array<i64: 1>, scalar_prefetch = 0 : i64, scratch_operands = 0 : i64, tpu.core_type = #tpu.core_type<tc>, window_params = [{transform_indices = @transform_0, window_bounds = array<i64: 8, 256>}, {transform_indices = @transform_1, window_bounds = array<i64: 8, 64>}, {transform_indices = @transform_2, window_bounds = array<i64: 8, 96>}, {transform_indices = @transform_3, window_bounds = array<i64: 8, 96>}]} {
    %c0 = arith.constant 0 : index
    %c0_0 = arith.constant 0 : index
    %0 = vector.load %arg1[%c0, %c0_0] : memref<8x256xf32, #tpu.memory_space<vmem>>, vector<8x64xf32>
    %c0_1 = arith.constant 0 : index
    %c0_2 = arith.constant 0 : index
    %1 = vector.load %arg2[%c0_1, %c0_2] : memref<8x64xf32, #tpu.memory_space<vmem>>, vector<8x64xf32>
    tpu.vector_store %arg2[%c0_1, %c0_2], %0 {strides = array<i32>} : memref<8x64xf32, #tpu.memory_space<vmem>>, vector<8x64xf32>,
    %c0_3 = arith.constant 0 : index
    %c64 = arith.constant 64 : index
    %2 = vector.load %arg1[%c0_3, %c64] : memref<8x256xf32, #tpu.memory_space<vmem>>, vector<8x96xf32>
    %c0_4 = arith.constant 0 : index
    %c0_5 = arith.constant 0 : index
    %3 = vector.load %arg3[%c0_4, %c0_5] : memref<8x96xf32, #tpu.memory_space<vmem>>, vector<8x96xf32>
    tpu.vector_store %arg3[%c0_4, %c0_5], %2 {strides = array<i32>} : memref<8x96xf32, #tpu.memory_space<vmem>>, vector<8x96xf32>,
    %c0_6 = arith.constant 0 : index
    %c160 = arith.constant 160 : index
    %4 = vector.load %arg1[%c0_6, %c160] : memref<8x256xf32, #tpu.memory_space<vmem>>, vector<8x96xf32>
    %c0_7 = arith.constant 0 : index
    %c0_8 = arith.constant 0 : index
    %5 = vector.load %arg4[%c0_7, %c0_8] : memref<8x96xf32, #tpu.memory_space<vmem>>, vector<8x96xf32>
    tpu.vector_store %arg4[%c0_7, %c0_8], %4 {strides = array<i32>} : memref<8x96xf32, #tpu.memory_space<vmem>>, vector<8x96xf32>,
    return
  }
  func.func @transform_0(%arg0: i32) -> (i32, i32) {
    %c0_i32 = arith.constant 0 : i32
    %c0_i32_0 = arith.constant 0 : i32
    return %arg0, %c0_i32 : i32, i32
  }
  func.func @transform_1(%arg0: i32) -> (i32, i32) {
    %c0_i32 = arith.constant 0 : i32
    %c0_i32_0 = arith.constant 0 : i32
    return %arg0, %c0_i32 : i32, i32
  }
  func.func @transform_2(%arg0: i32) -> (i32, i32) {
    %c0_i32 = arith.constant 0 : i32
    %c0_i32_0 = arith.constant 0 : i32
    return %arg0, %c0_i32 : i32, i32
  }
  func.func @transform_3(%arg0: i32) -> (i32, i32) {
    %c0_i32 = arith.constant 0 : i32
    %c0_i32_0 = arith.constant 0 : i32
    return %arg0, %c0_i32 : i32, i32
  }
}

</mosaic_0001>

<bundles_post_ra>
// kernel: tpu_custom_call.1
= control target key start
LH: loop header
LB: loop body
LE: loop exit
PB: predicated region body
PF: predicated region fallthrough
CT: control target
= control target key end

     0   :  { %9 = vsyncpa [#allocation3], 0  ;;  %s246_s0 = inlined_call_operand.hbm [shape: f32[8,256], index: 0, kind: input, shape index: {}]   ;;  %s247_s1 = inlined_call_operand.hbm [shape: f32[8,64], index: 1, kind: output, shape index: {0}]   ;;  %s248_s2 = inlined_call_operand.hbm [shape: f32[8,96], index: 2, kind: output, shape index: {1}]   ;;  %s249_s3 = inlined_call_operand.hbm [shape: f32[8,96], index: 3, kind: output, shape index: {2}]  }
   0x1   :  { %10 = vsyncpa [#allocation4], 0 }
   0x2   :  { %11 = vsyncpa [#allocation7], 0  ;;  %s17_s14 = sshll.u32 %s246_s0, 4  ;;  %s204_s15 = smov [#allocation2]   ;;  %s18_s14 = int_to_ptr.hbm [resolvable:$true] %s17_s14 }
   0x3   :  { %s19_s16 = sshll.u32 %s204_s15, 4  ;;  %s20_s16 = int_to_ptr.vmem [resolvable:$true] %s19_s16 }
   0x4   :  { %22 = dma.hbm_to_vmem [thread:$0]  %s18_s14, 256, %s20_s16, [#allocation3]  }
   0x5   :  { %198 = dma.done.wait [#allocation3], 256  }
   0x6   :  { %199 = vsyncadd [#allocation3], 4294967040  ;;  %v30_v0 = vld [vmem:[#allocation2] sm:$0xff]  ;;  %v31_v1 = vld [vmem:[#allocation2 + $0x8] sm:$0xff]  ;;  %s205_s17 = smov 64   ;;  %s206_s18 = smov 96  }
   0x7   :  { %34 = vrot.lane.b32.xlu0 %v30_v0, %s205_s17  ;;  %44 = vrot.lane.b32.xlu1 %v31_v1, %s206_s18  ;;  %s207_s19 = smov [#allocation5]   ;;  %s55_s0 = sshll.u32 %s247_s1, 4  ;;  %vm28_vm0 = vcmask 523264   ;;  %vm40_vm1 = vcmask 785408   ;;  %s56_s0 = int_to_ptr.hbm [resolvable:$true] %s55_s0 }
   0x8   :  { %s53_s20 = sshll.u32 %s207_s19, 4  ;;  %29 = vst.msk [vmem:[#allocation5] sm:$0xff] %vm28_vm0, %v30_v0  ;;  %s208_s23 = smov [#allocation6]   ;;  %s54_s20 = int_to_ptr.vmem [resolvable:$true] %s53_s20 }
   0x9   :  { %58 = dma.vmem_to_hbm [thread:$0]  %s54_s20, 128, %s56_s0, [#allocation4]  }
   0xa   :  { %s64_s24 = sshll.u32 %s208_s23, 4  ;;  %s66_s27 = sshll.u32 %s248_s2, 4  ;;  %s65_s24 = int_to_ptr.vmem [resolvable:$true] %s64_s24  ;;  %s67_s27 = int_to_ptr.hbm [resolvable:$true] %s66_s27 }
   0xb   :  { %s209_s28 = smov [#allocation8]   ;;  %s77_s4 = sshll.u32 %s249_s3, 4  ;;  %s78_s4 = int_to_ptr.hbm [resolvable:$true] %s77_s4 }
   0xc   :  { %s75_s29 = sshll.u32 %s209_s28, 4  ;;  %s76_s29 = int_to_ptr.vmem [resolvable:$true] %s75_s29 }
   0xf   :  { %36 = vrot.lane.b32.xlu0 %v31_v1, %s205_s17 }
  0x79   :  { %v35_v2 = vpop.permute.xlu0 %34  ;;  %v45_v3 = vpop.permute.xlu1 %44 }
  0x7a   :  { %47 = vst.msk [vmem:[#allocation8] sm:$0xff] %vm40_vm1, %v45_v3 }
  0x81   :  { %v37_v4 = vpop.permute.xlu0 %36 }
  0x82   :  { %v38_v5 = vsel %vm28_vm0, %v35_v2, %v37_v4 }
  0x83   :  { %41 = vst.msk [vmem:[#allocation6] sm:$0xff] %vm40_vm1, %v38_v5 }
  0x84   :  { %69 = dma.vmem_to_hbm [thread:$0]  %s65_s24, 128, %s67_s27, [#allocation7]  }
  0x85   :  { %80 = dma.vmem_to_hbm [thread:$0]  %s76_s29, 128, %s78_s4, [#allocation7]  }
  0x86   :  { %200 = dma.done.wait [#allocation4], 128  }
  0x87   :  { %201 = vsyncadd [#allocation4], 4294967168 }
  0x88   :  { %202 = dma.done.wait [#allocation7], 256  }
  0x89   :  { %203 = vsyncadd [#allocation7], 4294967040 }
  0x8a   :  { %93 = vsyncpa [#allocation3], 1 }
  0x8b   :  { %94 = vsyncpa [#allocation4], 1 }
  0x8c   :  { %95 = vsyncpa [#allocation7], 1 }

</bundles_post_ra>
